<compile_context>
chip_gen: v5e
topology: v5e:2x2
jax: 0.10.0
libtpu: 0.0.40
codegen_flags: <defaults>
</compile_context>

<pallas_src>
import jax
import jax.numpy as jnp
from jax.experimental import pallas as pl
from jax.experimental.pallas import tpu as pltpu

BN_EPS = 1e-3  # nn.BatchNorm1d(..., eps=0.001, momentum=0.01) in the reference


def _round_up(a, m):
    return -(-a // m) * m


# ----------------------------------------------------------------------------
# Kernel
# ----------------------------------------------------------------------------
def encoder_kernel(x_ref, y_ref, eps_ref,
                   w0_ref, b0_ref, w1_ref, b1_ref,
                   ws_ref, bs_ref, wmv_ref, bmv_ref,
                   out_ref):
    """Fused TotalMultiMaskedEncoder forward for one batch tile.

    x_ref, y_ref : [TB, D_pad]        f32  raw counts (log1p applied in-kernel)
    eps_ref      : [TB, O_pad]        f32  N(0,1) noise (zero in pad lanes)
    w0_ref       : [2, D_pad, M_pad]  bf16 per-head masked+BN-folded layer 0
    b0_ref       : [2, M_pad]         f32
    w1_ref       : [2, M_pad, H_pad]  bf16 per-head BN-folded layer 1
    b1_ref       : [2, H_pad]         f32
    ws_ref       : [3, H_pad, H_pad]  bf16 shared L0 (x-half, y-half), shared L1
    bs_ref       : [2, H_pad]         f32
    wmv_ref      : [H_pad, 2*O_pad]   f32  fused mean/var head (lane-aligned)
    bmv_ref      : [1, 2*O_pad]       f32
    out_ref      : [TB, 3*O_pad]      f32  [q_m | q_v | latent], 128-aligned
    """
    o_pad = eps_ref.shape[-1]

    # log_variational preprocessing (zero pad lanes stay 0: log1p(0)=0)
    hx = jnp.log1p(x_ref[...])                                   # [TB, D_pad]
    hy = jnp.log1p(y_ref[...])

    # Individual heads: (MaskedLinear + BN + ReLU) then (Linear + BN + ReLU).
    # Zero-padded lanes stay 0 through every layer: relu(0 @ W + 0) = 0.
    hx = jnp.maximum(jnp.dot(hx.astype(jnp.bfloat16), w0_ref[0],
                             preferred_element_type=jnp.float32)
                     + b0_ref[0:1, :], 0.0)                      # [TB, M_pad]
    hy = jnp.maximum(jnp.dot(hy.astype(jnp.bfloat16), w0_ref[1],
                             preferred_element_type=jnp.float32)
                     + b0_ref[1:2, :], 0.0)
    hx = jnp.maximum(jnp.dot(hx.astype(jnp.bfloat16), w1_ref[0],
                             preferred_element_type=jnp.float32)
                     + b1_ref[0:1, :], 0.0)                      # [TB, H_pad]
    hy = jnp.maximum(jnp.dot(hy.astype(jnp.bfloat16), w1_ref[1],
                             preferred_element_type=jnp.float32)
                     + b1_ref[1:2, :], 0.0)

    # Shared layer 0: concat([q_x, q_y]) @ Ws0 fused as two half-matmuls
    # (no in-kernel concatenate, no off-diagonal zero blocks on the MXU).
    h = jnp.dot(hx.astype(jnp.bfloat16), ws_ref[0],
                preferred_element_type=jnp.float32)
    h = h + jnp.dot(hy.astype(jnp.bfloat16), ws_ref[1],
                    preferred_element_type=jnp.float32)
    h = jnp.maximum(h + bs_ref[0:1, :], 0.0)                     # [TB, H_pad]

    # Shared layer 1.
    h = jnp.maximum(jnp.dot(h.astype(jnp.bfloat16), ws_ref[2],
                            preferred_element_type=jnp.float32)
                    + bs_ref[1:2, :], 0.0)

    # Fused mean/var head in f32 (small; keeps parity with the f32 module).
    mv = jnp.dot(h, wmv_ref[...], preferred_element_type=jnp.float32) \
        + bmv_ref[...]                                           # [TB, 2*O_pad]

    q_m = mv[:, :o_pad]
    raw = jnp.clip(mv[:, o_pad:], -4.0, 4.0)
    std = jnp.exp(0.25 * raw)          # = sqrt(exp(raw/2)); one EUP op, no sqrt
    q_v = std * std                    # = exp(clamp(raw)/2)  (torch semantics)
    z = q_m + std * eps_ref[...]       # reparameterize_gaussian

    # Three 128-lane-aligned, full-width slice stores (unmasked vst).
    out_ref[:, :o_pad] = q_m
    out_ref[:, o_pad:2 * o_pad] = q_v
    out_ref[:, 2 * o_pad:] = z


# ----------------------------------------------------------------------------
# Wrapper
# ----------------------------------------------------------------------------
def total_multi_masked_encoder(x, y, eps, params):
    """Runs the fused encoder. Returns (q_m, q_v, latent), each [B, n_output]."""
    B, d_in = x.shape
    n_out = eps.shape[1]

    w0, b0 = params["w0"], params["b0"]
    w1, b1 = params["w1"], params["b1"]
    ws, bs = params["ws"], params["bs"]
    wmv, bmv = params["wmv"], params["bmv"]

    d_pad, m_pad = w0.shape[1], w0.shape[2]
    h_pad = w1.shape[2]
    o_pad = wmv.shape[1] // 2

    # Both heads share the same mask -> same n_input; guard the packing layout.
    assert y.shape == (B, d_in), "x and y must have identical shapes"
    assert d_in <= d_pad and n_out <= o_pad and eps.shape[0] == B

    # Batch tiling: multiple of 16 rows (bf16 LHS), capped at 512 rows/tile;
    # prefer >=2 tiles so ("parallel",) can use both v7x TensorCores.
    tb = min(512, _round_up(B, 16))
    if B > 16:
        tb = min(tb, _round_up(-(-B // 2), 16))
    b_pad = _round_up(B, tb)

    def pad2(a, width):
        return jnp.pad(a.astype(jnp.float32),
                       ((0, b_pad - B), (0, width - a.shape[1])))

    xp = pad2(x, d_pad)
    yp = pad2(y, d_pad)
    ep = pad2(eps, o_pad)      # pad lanes are zero -> latent pad lanes stay q_m pad (0)

    # VMEM budget: resident weights (assume pipeliner may double-buffer them)
    # + double-buffered input/output tiles + activation temporaries.
    w_bytes = (w0.size + w1.size + ws.size) * 2 + wmv.size * 4
    b_bytes = (b0.size + b1.size + bs.size + bmv.size) * 4
    io_bytes = 2 * tb * (2 * d_pad + o_pad + 3 * o_pad) * 4
    tmp_bytes = tb * (2 * d_pad + 2 * m_pad + 4 * h_pad + 6 * o_pad) * 4
    need = 2 * (w_bytes + b_bytes) + io_bytes + tmp_bytes
    vmem_limit = int(min(64 * 1024 * 1024, max(32 * 1024 * 1024, 3 * need // 2)))

    out = pl.pallas_call(
        encoder_kernel,
        out_shape=jax.ShapeDtypeStruct((b_pad, 3 * o_pad), jnp.float32),
        grid_spec=pltpu.PrefetchScalarGridSpec(
            num_scalar_prefetch=0,
            grid=(b_pad // tb,),
            in_specs=[
                pl.BlockSpec((tb, d_pad), lambda i: (i, 0)),             # x
                pl.BlockSpec((tb, d_pad), lambda i: (i, 0)),             # y
                pl.BlockSpec((tb, o_pad), lambda i: (i, 0)),             # eps
                pl.BlockSpec((2, d_pad, m_pad), lambda i: (0, 0, 0)),    # w0 (resident)
                pl.BlockSpec((2, m_pad), lambda i: (0, 0)),              # b0
                pl.BlockSpec((2, m_pad, h_pad), lambda i: (0, 0, 0)),    # w1 (resident)
                pl.BlockSpec((2, h_pad), lambda i: (0, 0)),              # b1
                pl.BlockSpec((3, h_pad, h_pad), lambda i: (0, 0, 0)),    # ws (resident)
                pl.BlockSpec((2, h_pad), lambda i: (0, 0)),              # bs
                pl.BlockSpec((h_pad, 2 * o_pad), lambda i: (0, 0)),      # wmv (resident)
                pl.BlockSpec((1, 2 * o_pad), lambda i: (0, 0)),          # bmv
            ],
            out_specs=pl.BlockSpec((tb, 3 * o_pad), lambda i: (i, 0)),
        ),
        compiler_params=pltpu.CompilerParams(
            dimension_semantics=("parallel",),   # megacore: batch tiles across TCs
            vmem_limit_bytes=vmem_limit,
        ),
    )(xp, yp, ep, w0, b0, w1, b1, ws, bs, wmv, bmv)

    return (out[:B, :n_out],
            out[:B, o_pad:o_pad + n_out],
            out[:B, 2 * o_pad:2 * o_pad + n_out])


# ----------------------------------------------------------------------------
# Parameter construction (PyTorch layout) + static folding into kernel refs
# ----------------------------------------------------------------------------
def _init_linear(key, d_out, d_in):
    kw, kb = jax.random.split(key)
    bound = 1.0 / jnp.sqrt(d_in)
    w = jax.random.uniform(kw, (d_out, d_in), jnp.float32, -bound, bound)
    b = jax.random.uniform(kb, (d_out,), jnp.float32, -bound, bound)
    return w, b


def _init_bn(key, d):
    kg, kb, km, kv = jax.random.split(key, 4)
    gamma = 1.0 + 0.1 * jax.random.normal(kg, (d,), jnp.float32)
    beta = 0.1 * jax.random.normal(kb, (d,), jnp.float32)
    mean = 0.1 * jax.random.normal(km, (d,), jnp.float32)
    var = 1.0 + 0.1 * jax.random.uniform(kv, (d,), jnp.float32)
    return gamma, beta, mean, var


def init_torch_params(key, d_in, mask_dim, hidden, n_out):
    """PyTorch-layout parameters (Linear weight [out, in], BN running stats)."""
    mask = ((jnp.arange(mask_dim)[:, None] + jnp.arange(d_in)[None, :]) % 2
            ).astype(jnp.float32)                      # shared mask [M, d_in]
    keys = iter(jax.random.split(key, 24))
    p = {"mask": mask}
    for head in ("x", "y"):
        p[f"w0{head}"], p[f"b0{head}"] = _init_linear(next(keys), mask_dim, d_in)
        p[f"bn0{head}"] = _init_bn(next(keys), mask_dim)
        p[f"w1{head}"], p[f"b1{head}"] = _init_linear(next(keys), hidden, mask_dim)
        p[f"bn1{head}"] = _init_bn(next(keys), hidden)
    p["ws0"], p["bs0"] = _init_linear(next(keys), hidden, 2 * hidden)
    p["bns0"] = _init_bn(next(keys), hidden)
    p["ws1"], p["bs1"] = _init_linear(next(keys), hidden, hidden)
    p["bns1"] = _init_bn(next(keys), hidden)
    p["wm"], p["bm"] = _init_linear(next(keys), n_out, hidden)
    p["wv"], p["bv"] = _init_linear(next(keys), n_out, hidden)
    return p


def _fold_linear_bn(w, b, bn):
    """Fold eval-mode BatchNorm1d into a Linear: returns W' [in,out], b' [out]."""
    gamma, beta, mean, var = bn
    s = gamma / jnp.sqrt(var + BN_EPS)
    return w.T * s[None, :], (b - mean) * s + beta


def fold_params(p, d_in, mask_dim, hidden, n_out):
    """Fold mask/BN into weights and pack into per-layer ragged-padded refs."""
    dp = _round_up(d_in, 128)
    mp = _round_up(mask_dim, 128)
    hp = _round_up(hidden, 128)
    op = _round_up(n_out, 128)

    w0 = jnp.zeros((2, dp, mp), jnp.float32)
    b0 = jnp.zeros((2, mp), jnp.float32)
    w1 = jnp.zeros((2, mp, hp), jnp.float32)
    b1 = jnp.zeros((2, hp), jnp.float32)
    ws = jnp.zeros((3, hp, hp), jnp.float32)
    bs = jnp.zeros((2, hp), jnp.float32)
    wmv = jnp.zeros((hp, 2 * op), jnp.float32)
    bmv = jnp.zeros((1, 2 * op), jnp.float32)

    # Per-head layers 0/1 (MaskedLinear+BN+ReLU, Linear+BN+ReLU).
    for hi, head in enumerate(("x", "y")):
        wt, bt = _fold_linear_bn(p[f"w0{head}"] * p["mask"], p[f"b0{head}"],
                                 p[f"bn0{head}"])
        w0 = w0.at[hi, :d_in, :mask_dim].set(wt)
        b0 = b0.at[hi, :mask_dim].set(bt)
        wt, bt = _fold_linear_bn(p[f"w1{head}"], p[f"b1{head}"], p[f"bn1{head}"])
        w1 = w1.at[hi, :mask_dim, :hidden].set(wt)
        b1 = b1.at[hi, :hidden].set(bt)

    # Shared layer 0 split into x-half / y-half (fuses the q_x|q_y concat).
    wt, bt = _fold_linear_bn(p["ws0"], p["bs0"], p["bns0"])   # wt: [2H, H]
    ws = ws.at[0, :hidden, :hidden].set(wt[:hidden])
    ws = ws.at[1, :hidden, :hidden].set(wt[hidden:])
    bs = bs.at[0, :hidden].set(bt)
    # Shared layer 1.
    wt, bt = _fold_linear_bn(p["ws1"], p["bs1"], p["bns1"])
    ws = ws.at[2, :hidden, :hidden].set(wt)
    bs = bs.at[1, :hidden].set(bt)

    # Fused mean/var head, lane-aligned: wm at cols [0,O), wv at [O_pad,O_pad+O).
    wmv = wmv.at[:hidden, :n_out].set(p["wm"].T)
    wmv = wmv.at[:hidden, op:op + n_out].set(p["wv"].T)
    bmv = bmv.at[0, :n_out].set(p["bm"])
    bmv = bmv.at[0, op:op + n_out].set(p["bv"])

    return {
        "w0": w0.astype(jnp.bfloat16), "b0": b0,
        "w1": w1.astype(jnp.bfloat16), "b1": b1,
        "ws": ws.astype(jnp.bfloat16), "bs": bs,
        "wmv": wmv, "bmv": bmv,        # final head + all biases stay f32
    }


# ----------------------------------------------------------------------------
# Pure-JAX f32 reference mirroring the PyTorch module (eval mode)
# ----------------------------------------------------------------------------
def _ref_layer(h, w, b, bn):
    gamma, beta, mean, var = bn
    h = h @ w.T + b
    h = (h - mean) / jnp.sqrt(var + BN_EPS) * gamma + beta
    return jnp.maximum(h, 0.0)


def reference_forward(x, y, eps, p):
    x_, y_ = jnp.log1p(x), jnp.log1p(y)
    qx = _ref_layer(x_, p["w0x"] * p["mask"], p["b0x"], p["bn0x"])
    qx = _ref_layer(qx, p["w1x"], p["b1x"], p["bn1x"])
    qy = _ref_layer(y_, p["w0y"] * p["mask"], p["b0y"], p["bn0y"])
    qy = _ref_layer(qy, p["w1y"], p["b1y"], p["bn1y"])
    q = jnp.concatenate([qx, qy], axis=-1)
    q = _ref_layer(q, p["ws0"], p["bs0"], p["bns0"])
    q = _ref_layer(q, p["ws1"], p["bs1"], p["bns1"])
    q_m = q @ p["wm"].T + p["bm"]
    q_v = jnp.exp(jnp.clip(q @ p["wv"].T + p["bv"], -4.0, 4.0) / 2.0)
    return q_m, q_v, q_m + jnp.sqrt(q_v) * eps


# ----------------------------------------------------------------------------
# Main
# ----------------------------------------------------------------------------
if __name__ == "__main__":
    B, D, M, H, O = 8, 16, 24, 32, 8   # batch, n_input per head, mask rows,
                                       # n_hidden, n_output

    key = jax.random.PRNGKey(0)
    kx, ky, keps, kp = jax.random.split(key, 4)
    x = 5.0 * jax.random.uniform(kx, (B, D), jnp.float32)    # count-like data
    y = 5.0 * jax.random.uniform(ky, (B, D), jnp.float32)
    eps = jax.random.normal(keps, (B, O), jnp.float32)       # rsample noise

    torch_params = init_torch_params(kp, D, M, H, O)
    params = fold_params(torch_params, D, M, H, O)

    q_m, q_v, latent = total_multi_masked_encoder(x, y, eps, params)
    jax.block_until_ready((q_m, q_v, latent))

    # Sanity checks: shapes, positivity, and agreement with the f32 reference
    # (hidden-layer matmuls use bf16 operands -> moderate tolerance; final
    #  mean/var head is f32).
    rq_m, rq_v, rz = reference_forward(x, y, eps, torch_params)
    assert q_m.shape == (B, O) and q_v.shape == (B, O) and latent.shape == (B, O)
    assert bool(jnp.all(q_v > 0.0))
    for got, want in zip((q_m, q_v, latent), (rq_m, rq_v, rz)):
        assert bool(jnp.allclose(got, want, rtol=0.1, atol=0.1)), (
            float(jnp.max(jnp.abs(got - want))))
    print("KERNEL_OK")
</pallas_src>

<mosaic_0001>
module attributes {stable_mosaic.version = 11 : i64} {
  func.func @encoder_kernel(%arg0: i32, %arg1: memref<16x128xf32, #tpu.memory_space<vmem>>, %arg2: memref<16x128xf32, #tpu.memory_space<vmem>>, %arg3: memref<16x128xf32, #tpu.memory_space<vmem>>, %arg4: memref<2x128x128xbf16, #tpu.memory_space<vmem>>, %arg5: memref<2x128xf32, #tpu.memory_space<vmem>>, %arg6: memref<2x128x128xbf16, #tpu.memory_space<vmem>>, %arg7: memref<2x128xf32, #tpu.memory_space<vmem>>, %arg8: memref<3x128x128xbf16, #tpu.memory_space<vmem>>, %arg9: memref<2x128xf32, #tpu.memory_space<vmem>>, %arg10: memref<128x256xf32, #tpu.memory_space<vmem>>, %arg11: memref<1x256xf32, #tpu.memory_space<vmem>>, %arg12: memref<16x384xf32, #tpu.memory_space<vmem>>) attributes {dimension_semantics = [#tpu.dimension_semantics<parallel>], iteration_bounds = array<i64: 1>, scalar_prefetch = 0 : i64, scratch_operands = 0 : i64, tpu.core_type = #tpu.core_type<tc>, window_params = [{transform_indices = @transform_0, window_bounds = array<i64: 16, 128>}, {transform_indices = @transform_1, window_bounds = array<i64: 16, 128>}, {transform_indices = @transform_2, window_bounds = array<i64: 16, 128>}, {pipeline_mode = #tpu.pipeline_mode<synchronous>, transform_indices = @transform_3, window_bounds = array<i64: 2, 128, 128>}, {pipeline_mode = #tpu.pipeline_mode<synchronous>, transform_indices = @transform_4, window_bounds = array<i64: 2, 128>}, {pipeline_mode = #tpu.pipeline_mode<synchronous>, transform_indices = @transform_5, window_bounds = array<i64: 2, 128, 128>}, {pipeline_mode = #tpu.pipeline_mode<synchronous>, transform_indices = @transform_6, window_bounds = array<i64: 2, 128>}, {pipeline_mode = #tpu.pipeline_mode<synchronous>, transform_indices = @transform_7, window_bounds = array<i64: 3, 128, 128>}, {pipeline_mode = #tpu.pipeline_mode<synchronous>, transform_indices = @transform_8, window_bounds = array<i64: 2, 128>}, {pipeline_mode = #tpu.pipeline_mode<synchronous>, transform_indices = @transform_9, window_bounds = array<i64: 128, 256>}, {pipeline_mode = #tpu.pipeline_mode<synchronous>, transform_indices = @transform_10, window_bounds = array<i64: 1, 256>}, {transform_indices = @transform_11, window_bounds = array<i64: 16, 384>}]} {
    %c0 = arith.constant 0 : index
    %c0_0 = arith.constant 0 : index
    %0 = vector.load %arg1[%c0, %c0_0] : memref<16x128xf32, #tpu.memory_space<vmem>>, vector<16x128xf32>
    %1 = math.log1p %0 : vector<16x128xf32>
    %c0_1 = arith.constant 0 : index
    %c0_2 = arith.constant 0 : index
    %2 = vector.load %arg2[%c0_1, %c0_2] : memref<16x128xf32, #tpu.memory_space<vmem>>, vector<16x128xf32>
    %3 = math.log1p %2 : vector<16x128xf32>
    %4 = arith.truncf %1 : vector<16x128xf32> to vector<16x128xbf16>
    %c0_3 = arith.constant 0 : index
    %c0_4 = arith.constant 0 : index
    %c0_5 = arith.constant 0 : index
    %5 = vector.load %arg4[%c0_3, %c0_4, %c0_5] : memref<2x128x128xbf16, #tpu.memory_space<vmem>>, vector<1x128x128xbf16>
    %6 = vector.shape_cast %5 : vector<1x128x128xbf16> to vector<128x128xbf16>
    %cst = arith.constant dense<0.000000e+00> : vector<16x128xf32>
    %7 = tpu.matmul %4, %6, %cst {dimension_numbers = #tpu.dot_dimension_numbers<[1], [0], [0], [1], [0, 0, 1, 1], [], []>} : vector<16x128xbf16>, vector<128x128xbf16>, vector<16x128xf32> -> vector<16x128xf32>
    %c0_6 = arith.constant 0 : index
    %c0_7 = arith.constant 0 : index
    %8 = vector.load %arg5[%c0_6, %c0_7] : memref<2x128xf32, #tpu.memory_space<vmem>>, vector<1x128xf32>
    %9 = vector.broadcast %8 : vector<1x128xf32> to vector<16x128xf32>
    %10 = arith.addf %7, %9 : vector<16x128xf32>
    %cst_8 = arith.constant 0.000000e+00 : f32
    %11 = vector.broadcast %cst_8 : f32 to vector<16x128xf32>
    %12 = arith.maximumf %10, %11 : vector<16x128xf32>
    %13 = arith.truncf %3 : vector<16x128xf32> to vector<16x128xbf16>
    %c1 = arith.constant 1 : index
    %c0_9 = arith.constant 0 : index
    %c0_10 = arith.constant 0 : index
    %14 = vector.load %arg4[%c1, %c0_9, %c0_10] : memref<2x128x128xbf16, #tpu.memory_space<vmem>>, vector<1x128x128xbf16>
    %15 = vector.shape_cast %14 : vector<1x128x128xbf16> to vector<128x128xbf16>
    %cst_11 = arith.constant dense<0.000000e+00> : vector<16x128xf32>
    %16 = tpu.matmul %13, %15, %cst_11 {dimension_numbers = #tpu.dot_dimension_numbers<[1], [0], [0], [1], [0, 0, 1, 1], [], []>} : vector<16x128xbf16>, vector<128x128xbf16>, vector<16x128xf32> -> vector<16x128xf32>
    %c1_12 = arith.constant 1 : index
    %c0_13 = arith.constant 0 : index
    %17 = vector.load %arg5[%c1_12, %c0_13] : memref<2x128xf32, #tpu.memory_space<vmem>>, vector<1x128xf32>
    %18 = vector.broadcast %17 : vector<1x128xf32> to vector<16x128xf32>
    %19 = arith.addf %16, %18 : vector<16x128xf32>
    %cst_14 = arith.constant 0.000000e+00 : f32
    %20 = vector.broadcast %cst_14 : f32 to vector<16x128xf32>
    %21 = arith.maximumf %19, %20 : vector<16x128xf32>
    %22 = arith.truncf %12 : vector<16x128xf32> to vector<16x128xbf16>
    %c0_15 = arith.constant 0 : index
    %c0_16 = arith.constant 0 : index
    %c0_17 = arith.constant 0 : index
    %23 = vector.load %arg6[%c0_15, %c0_16, %c0_17] : memref<2x128x128xbf16, #tpu.memory_space<vmem>>, vector<1x128x128xbf16>
    %24 = vector.shape_cast %23 : vector<1x128x128xbf16> to vector<128x128xbf16>
    %cst_18 = arith.constant dense<0.000000e+00> : vector<16x128xf32>
    %25 = tpu.matmul %22, %24, %cst_18 {dimension_numbers = #tpu.dot_dimension_numbers<[1], [0], [0], [1], [0, 0, 1, 1], [], []>} : vector<16x128xbf16>, vector<128x128xbf16>, vector<16x128xf32> -> vector<16x128xf32>
    %c0_19 = arith.constant 0 : index
    %c0_20 = arith.constant 0 : index
    %26 = vector.load %arg7[%c0_19, %c0_20] : memref<2x128xf32, #tpu.memory_space<vmem>>, vector<1x128xf32>
    %27 = vector.broadcast %26 : vector<1x128xf32> to vector<16x128xf32>
    %28 = arith.addf %25, %27 : vector<16x128xf32>
    %cst_21 = arith.constant 0.000000e+00 : f32
    %29 = vector.broadcast %cst_21 : f32 to vector<16x128xf32>
    %30 = arith.maximumf %28, %29 : vector<16x128xf32>
    %31 = arith.truncf %21 : vector<16x128xf32> to vector<16x128xbf16>
    %c1_22 = arith.constant 1 : index
    %c0_23 = arith.constant 0 : index
    %c0_24 = arith.constant 0 : index
    %32 = vector.load %arg6[%c1_22, %c0_23, %c0_24] : memref<2x128x128xbf16, #tpu.memory_space<vmem>>, vector<1x128x128xbf16>
    %33 = vector.shape_cast %32 : vector<1x128x128xbf16> to vector<128x128xbf16>
    %cst_25 = arith.constant dense<0.000000e+00> : vector<16x128xf32>
    %34 = tpu.matmul %31, %33, %cst_25 {dimension_numbers = #tpu.dot_dimension_numbers<[1], [0], [0], [1], [0, 0, 1, 1], [], []>} : vector<16x128xbf16>, vector<128x128xbf16>, vector<16x128xf32> -> vector<16x128xf32>
    %c1_26 = arith.constant 1 : index
    %c0_27 = arith.constant 0 : index
    %35 = vector.load %arg7[%c1_26, %c0_27] : memref<2x128xf32, #tpu.memory_space<vmem>>, vector<1x128xf32>
    %36 = vector.broadcast %35 : vector<1x128xf32> to vector<16x128xf32>
    %37 = arith.addf %34, %36 : vector<16x128xf32>
    %cst_28 = arith.constant 0.000000e+00 : f32
    %38 = vector.broadcast %cst_28 : f32 to vector<16x128xf32>
    %39 = arith.maximumf %37, %38 : vector<16x128xf32>
    %40 = arith.truncf %30 : vector<16x128xf32> to vector<16x128xbf16>
    %c0_29 = arith.constant 0 : index
    %c0_30 = arith.constant 0 : index
    %c0_31 = arith.constant 0 : index
    %41 = vector.load %arg8[%c0_29, %c0_30, %c0_31] : memref<3x128x128xbf16, #tpu.memory_space<vmem>>, vector<1x128x128xbf16>
    %42 = vector.shape_cast %41 : vector<1x128x128xbf16> to vector<128x128xbf16>
    %cst_32 = arith.constant dense<0.000000e+00> : vector<16x128xf32>
    %43 = tpu.matmul %40, %42, %cst_32 {dimension_numbers = #tpu.dot_dimension_numbers<[1], [0], [0], [1], [0, 0, 1, 1], [], []>} : vector<16x128xbf16>, vector<128x128xbf16>, vector<16x128xf32> -> vector<16x128xf32>
    %44 = arith.truncf %39 : vector<16x128xf32> to vector<16x128xbf16>
    %c1_33 = arith.constant 1 : index
    %c0_34 = arith.constant 0 : index
    %c0_35 = arith.constant 0 : index
    %45 = vector.load %arg8[%c1_33, %c0_34, %c0_35] : memref<3x128x128xbf16, #tpu.memory_space<vmem>>, vector<1x128x128xbf16>
    %46 = vector.shape_cast %45 : vector<1x128x128xbf16> to vector<128x128xbf16>
    %cst_36 = arith.constant dense<0.000000e+00> : vector<16x128xf32>
    %47 = tpu.matmul %44, %46, %cst_36 {dimension_numbers = #tpu.dot_dimension_numbers<[1], [0], [0], [1], [0, 0, 1, 1], [], []>} : vector<16x128xbf16>, vector<128x128xbf16>, vector<16x128xf32> -> vector<16x128xf32>
    %48 = arith.addf %43, %47 : vector<16x128xf32>
    %c0_37 = arith.constant 0 : index
    %c0_38 = arith.constant 0 : index
    %49 = vector.load %arg9[%c0_37, %c0_38] : memref<2x128xf32, #tpu.memory_space<vmem>>, vector<1x128xf32>
    %50 = vector.broadcast %49 : vector<1x128xf32> to vector<16x128xf32>
    %51 = arith.addf %48, %50 : vector<16x128xf32>
    %cst_39 = arith.constant 0.000000e+00 : f32
    %52 = vector.broadcast %cst_39 : f32 to vector<16x128xf32>
    %53 = arith.maximumf %51, %52 : vector<16x128xf32>
    %54 = arith.truncf %53 : vector<16x128xf32> to vector<16x128xbf16>
    %c2 = arith.constant 2 : index
    %c0_40 = arith.constant 0 : index
    %c0_41 = arith.constant 0 : index
    %55 = vector.load %arg8[%c2, %c0_40, %c0_41] : memref<3x128x128xbf16, #tpu.memory_space<vmem>>, vector<1x128x128xbf16>
    %56 = vector.shape_cast %55 : vector<1x128x128xbf16> to vector<128x128xbf16>
    %cst_42 = arith.constant dense<0.000000e+00> : vector<16x128xf32>
    %57 = tpu.matmul %54, %56, %cst_42 {dimension_numbers = #tpu.dot_dimension_numbers<[1], [0], [0], [1], [0, 0, 1, 1], [], []>} : vector<16x128xbf16>, vector<128x128xbf16>, vector<16x128xf32> -> vector<16x128xf32>
    %c1_43 = arith.constant 1 : index
    %c0_44 = arith.constant 0 : index
    %58 = vector.load %arg9[%c1_43, %c0_44] : memref<2x128xf32, #tpu.memory_space<vmem>>, vector<1x128xf32>
    %59 = vector.broadcast %58 : vector<1x128xf32> to vector<16x128xf32>
    %60 = arith.addf %57, %59 : vector<16x128xf32>
    %cst_45 = arith.constant 0.000000e+00 : f32
    %61 = vector.broadcast %cst_45 : f32 to vector<16x128xf32>
    %62 = arith.maximumf %60, %61 : vector<16x128xf32>
    %c0_46 = arith.constant 0 : index
    %c0_47 = arith.constant 0 : index
    %63 = vector.load %arg10[%c0_46, %c0_47] : memref<128x256xf32, #tpu.memory_space<vmem>>, vector<128x256xf32>
    %cst_48 = arith.constant dense<0.000000e+00> : vector<16x256xf32>
    %64 = tpu.matmul %62, %63, %cst_48 {dimension_numbers = #tpu.dot_dimension_numbers<[1], [0], [0], [1], [0, 0, 1, 1], [], []>} : vector<16x128xf32>, vector<128x256xf32>, vector<16x256xf32> -> vector<16x256xf32>
    %c0_49 = arith.constant 0 : index
    %c0_50 = arith.constant 0 : index
    %65 = vector.load %arg11[%c0_49, %c0_50] : memref<1x256xf32, #tpu.memory_space<vmem>>, vector<1x256xf32>
    %66 = vector.broadcast %65 : vector<1x256xf32> to vector<16x256xf32>
    %67 = arith.addf %64, %66 : vector<16x256xf32>
    %68 = vector.extract_strided_slice %67 {offsets = [0, 0], sizes = [16, 128], strides = [1, 1]} : vector<16x256xf32> to vector<16x128xf32>
    %69 = vector.extract_strided_slice %67 {offsets = [0, 128], sizes = [16, 128], strides = [1, 1]} : vector<16x256xf32> to vector<16x128xf32>
    %cst_51 = arith.constant -4.000000e+00 : f32
    %cst_52 = arith.constant 4.000000e+00 : f32
    %70 = vector.broadcast %cst_51 : f32 to vector<16x128xf32>
    %71 = arith.maximumf %70, %69 : vector<16x128xf32>
    %72 = vector.broadcast %cst_52 : f32 to vector<16x128xf32>
    %73 = arith.minimumf %72, %71 : vector<16x128xf32>
    %cst_53 = arith.constant 2.500000e-01 : f32
    %74 = vector.broadcast %cst_53 : f32 to vector<16x128xf32>
    %75 = arith.mulf %74, %73 : vector<16x128xf32>
    %76 = math.exp %75 : vector<16x128xf32>
    %77 = arith.mulf %76, %76 : vector<16x128xf32>
    %c0_54 = arith.constant 0 : index
    %c0_55 = arith.constant 0 : index
    %78 = vector.load %arg3[%c0_54, %c0_55] : memref<16x128xf32, #tpu.memory_space<vmem>>, vector<16x128xf32>
    %79 = arith.mulf %76, %78 : vector<16x128xf32>
    %80 = arith.addf %68, %79 : vector<16x128xf32>
    %c0_56 = arith.constant 0 : index
    %c0_57 = arith.constant 0 : index
    %81 = vector.load %arg12[%c0_56, %c0_57] : memref<16x384xf32, #tpu.memory_space<vmem>>, vector<16x128xf32>
    tpu.vector_store %arg12[%c0_56, %c0_57], %68 {strides = array<i32>} : memref<16x384xf32, #tpu.memory_space<vmem>>, vector<16x128xf32>,
    %c0_58 = arith.constant 0 : index
    %c128 = arith.constant 128 : index
    %82 = vector.load %arg12[%c0_58, %c128] : memref<16x384xf32, #tpu.memory_space<vmem>>, vector<16x128xf32>
    tpu.vector_store %arg12[%c0_58, %c128], %77 {strides = array<i32>} : memref<16x384xf32, #tpu.memory_space<vmem>>, vector<16x128xf32>,
    %c0_59 = arith.constant 0 : index
    %c256 = arith.constant 256 : index
    %83 = vector.load %arg12[%c0_59, %c256] : memref<16x384xf32, #tpu.memory_space<vmem>>, vector<16x128xf32>
    tpu.vector_store %arg12[%c0_59, %c256], %80 {strides = array<i32>} : memref<16x384xf32, #tpu.memory_space<vmem>>, vector<16x128xf32>,
    return
  }
  func.func @transform_0(%arg0: i32) -> (i32, i32) {
    %c0_i32 = arith.constant 0 : i32
    %c0_i32_0 = arith.constant 0 : i32
    return %arg0, %c0_i32 : i32, i32
  }
  func.func @transform_1(%arg0: i32) -> (i32, i32) {
    %c0_i32 = arith.constant 0 : i32
    %c0_i32_0 = arith.constant 0 : i32
    return %arg0, %c0_i32 : i32, i32
  }
  func.func @transform_2(%arg0: i32) -> (i32, i32) {
    %c0_i32 = arith.constant 0 : i32
    %c0_i32_0 = arith.constant 0 : i32
    return %arg0, %c0_i32 : i32, i32
  }
  func.func @transform_3(%arg0: i32) -> (i32, i32, i32) {
    %c0_i32 = arith.constant 0 : i32
    %c0_i32_0 = arith.constant 0 : i32
    %c0_i32_1 = arith.constant 0 : i32
    %c0_i32_2 = arith.constant 0 : i32
    return %c0_i32, %c0_i32_0, %c0_i32_1 : i32, i32, i32
  }
  func.func @transform_4(%arg0: i32) -> (i32, i32) {
    %c0_i32 = arith.constant 0 : i32
    %c0_i32_0 = arith.constant 0 : i32
    %c0_i32_1 = arith.constant 0 : i32
    return %c0_i32, %c0_i32_0 : i32, i32
  }
  func.func @transform_5(%arg0: i32) -> (i32, i32, i32) {
    %c0_i32 = arith.constant 0 : i32
    %c0_i32_0 = arith.constant 0 : i32
    %c0_i32_1 = arith.constant 0 : i32
    %c0_i32_2 = arith.constant 0 : i32
    return %c0_i32, %c0_i32_0, %c0_i32_1 : i32, i32, i32
  }
  func.func @transform_6(%arg0: i32) -> (i32, i32) {
    %c0_i32 = arith.constant 0 : i32
    %c0_i32_0 = arith.constant 0 : i32
    %c0_i32_1 = arith.constant 0 : i32
    return %c0_i32, %c0_i32_0 : i32, i32
  }
  func.func @transform_7(%arg0: i32) -> (i32, i32, i32) {
    %c0_i32 = arith.constant 0 : i32
    %c0_i32_0 = arith.constant 0 : i32
    %c0_i32_1 = arith.constant 0 : i32
    %c0_i32_2 = arith.constant 0 : i32
    return %c0_i32, %c0_i32_0, %c0_i32_1 : i32, i32, i32
  }
  func.func @transform_8(%arg0: i32) -> (i32, i32) {
    %c0_i32 = arith.constant 0 : i32
    %c0_i32_0 = arith.constant 0 : i32
    %c0_i32_1 = arith.constant 0 : i32
    return %c0_i32, %c0_i32_0 : i32, i32
  }
  func.func @transform_9(%arg0: i32) -> (i32, i32) {
    %c0_i32 = arith.constant 0 : i32
    %c0_i32_0 = arith.constant 0 : i32
    %c0_i32_1 = arith.constant 0 : i32
    return %c0_i32, %c0_i32_0 : i32, i32
  }
  func.func @transform_10(%arg0: i32) -> (i32, i32) {
    %c0_i32 = arith.constant 0 : i32
    %c0_i32_0 = arith.constant 0 : i32
    %c0_i32_1 = arith.constant 0 : i32
    return %c0_i32, %c0_i32_0 : i32, i32
  }
  func.func @transform_11(%arg0: i32) -> (i32, i32) {
    %c0_i32 = arith.constant 0 : i32
    %c0_i32_0 = arith.constant 0 : i32
    return %arg0, %c0_i32 : i32, i32
  }
}

</mosaic_0001>

<bundles_post_ra>
// kernel: tpu_custom_call.1
= control target key start
LH: loop header
LB: loop body
LE: loop exit
PB: predicated region body
PF: predicated region fallthrough
CT: control target
= control target key end

     0   :  { %16 = vsyncpa [#allocation3], 0  ;;  %s1598_s0 = inlined_call_operand.hbm [shape: f32[16,128], index: 0, kind: input, shape index: {}]   ;;  %s1599_s1 = inlined_call_operand.hbm [shape: f32[16,128], index: 1, kind: input, shape index: {}]   ;;  %s1600_s2 = inlined_call_operand.hbm [shape: f32[16,128], index: 2, kind: input, shape index: {}]   ;;  %s1601_s3 = inlined_call_operand.hbm [shape: bf16[2,128,128], index: 3, kind: input, shape index: {}]   ;;  %s1602_s4 = inlined_call_operand.vmem [shape: f32[2,128], index: 4, kind: input, shape index: {}]   ;;  %s1603_s5 = inlined_call_operand.hbm [shape: bf16[2,128,128], index: 5, kind: input, shape index: {}]   ;;  %s1604_s6 = inlined_call_operand.vmem [shape: f32[2,128], index: 6, kind: input, shape index: {}]   ;;  %s1605_s7 = inlined_call_operand.hbm [shape: bf16[3,128,128], index: 7, kind: input, shape index: {}]   ;;  %s1606_s8 = inlined_call_operand.vmem [shape: f32[2,128], index: 8, kind: input, shape index: {}]   ;;  %s1607_s9 = inlined_call_operand.hbm [shape: f32[128,256], index: 9, kind: input, shape index: {}]   ;;  %s1608_s10 = inlined_call_operand.vmem [shape: f32[1,256], index: 10, kind: input, shape index: {}]   ;;  %s1609_s11 = inlined_call_operand.hbm [shape: f32[16,384], index: 11, kind: output, shape index: {}]  }
   0x1   :  { %17 = vsyncpa [#allocation6], 0 }
   0x2   :  { %18 = vsyncpa [#allocation9], 0 }
   0x3   :  { %19 = vsyncpa [#allocation12], 0 }
   0x4   :  { %20 = vsyncpa [#allocation4], 0  ;;  %s38_s19 = sshll.u32 %s1599_s1, 4  ;;  %s1435_s20 = smov [#allocation5]   ;;  %s39_s19 = int_to_ptr.hbm [resolvable:$true] %s38_s19 }
   0x5   :  { %s40_s21 = sshll.u32 %s1435_s20, 4  ;;  %s64_s24 = sshll.u32 %s1601_s3, 4  ;;  %s41_s21 = int_to_ptr.vmem [resolvable:$true] %s40_s21  ;;  %s65_s24 = int_to_ptr.hbm [resolvable:$true] %s64_s24 }
   0x6   :  { %s1436_s25 = smov 128   ;;  %s1437_s26 = smov 8  }
   0x7   :  { %46 = dma.hbm_to_vmem [thread:$0]  %s39_s19, 256, %s41_s21, [#allocation6], %s1436_s25, %s1436_s25, %s1437_s26  }
   0x8   :  { %s1438_s27 = smov [#allocation8]   ;;  %s1439_s29 = smov 64  }
   0x9   :  { %s66_s28 = sshll.u32 %s1438_s27, 4  ;;  %s1440_s1 = smov 4   ;;  %s67_s28 = int_to_ptr.vmem [resolvable:$true] %s66_s28 }
   0xa   :  { %72 = dma.hbm_to_vmem [thread:$0]  %s65_s24, 2048, %s67_s28, [#allocation9], %s1439_s29, %s1439_s29, %s1440_s1  }
   0xb   :  { %s94_s3 = sshll.u32 %s1605_s7, 4  ;;  %s1441_s13 = smov [#allocation11]   ;;  %s95_s3 = int_to_ptr.hbm [resolvable:$true] %s94_s3 }
   0xc   :  { %s96_s14 = sshll.u32 %s1441_s13, 4  ;;  %s25_s17 = sshll.u32 %s1598_s0, 4  ;;  %s97_s14 = int_to_ptr.vmem [resolvable:$true] %s96_s14  ;;  %s26_s17 = int_to_ptr.hbm [resolvable:$true] %s25_s17 }
   0xd   :  { %102 = dma.hbm_to_vmem [thread:$0]  %s95_s3, 3072, %s97_s14, [#allocation12], %s1439_s29, %s1439_s29, %s1440_s1  }
   0xe   :  { %s1442_s18 = smov [#allocation2]   ;;  %s51_s22 = sshll.u32 %s1600_s2, 4  ;;  %s52_s22 = int_to_ptr.hbm [resolvable:$true] %s51_s22 }
   0xf   :  { %s27_s19 = sshll.u32 %s1442_s18, 4  ;;  %s79_s0 = sshll.u32 %s1603_s5, 4  ;;  %s28_s19 = int_to_ptr.vmem [resolvable:$true] %s27_s19  ;;  %s80_s0 = int_to_ptr.hbm [resolvable:$true] %s79_s0 }
  0x10   :  { %33 = dma.hbm_to_vmem [thread:$0]  %s26_s17, 256, %s28_s19, [#allocation3], %s1436_s25, %s1436_s25, %s1437_s26  }
  0x11   :  { %s1443_s24 = smov [#allocation7]   ;;  %s1444_s28 = smov [#allocation10]  }
  0x12   :  { %s53_s27 = sshll.u32 %s1443_s24, 4  ;;  %s81_s2 = sshll.u32 %s1444_s28, 4  ;;  %s54_s27 = int_to_ptr.vmem [resolvable:$true] %s53_s27  ;;  %s82_s2 = int_to_ptr.vmem [resolvable:$true] %s81_s2 }
  0x13   :  { %59 = dma.hbm_to_vmem [thread:$0]  %s52_s22, 256, %s54_s27, [#allocation6], %s1436_s25, %s1436_s25, %s1437_s26  }
  0x14   :  { %s109_s3 = sshll.u32 %s1607_s9, 4  ;;  %s1445_s5 = smov [#allocation13]   ;;  %s110_s3 = int_to_ptr.hbm [resolvable:$true] %s109_s3 }
  0x15   :  { %87 = dma.hbm_to_vmem [thread:$0]  %s80_s0, 2048, %s82_s2, [#allocation9], %s1439_s29, %s1439_s29, %s1440_s1  }
  0x16   :  { %s111_s13 = sshll.u32 %s1445_s5, 4  ;;  %s1446_s14 = smov 256   ;;  %s112_s13 = int_to_ptr.vmem [resolvable:$true] %s111_s13 }
  0x17   :  { %s1447_s15 = smov 16  }
  0x18   :  { %117 = dma.hbm_to_vmem [thread:$0]  %s110_s3, 4096, %s112_s13, [#allocation12], %s1446_s14, %s1446_s14, %s1447_s15  }
  0x19   :  { %1425 = dma.done.wait [#allocation3], 256  }
  0x1a   :  { %1426 = vsyncadd [#allocation3], 4294967040 }
  0x1b   :  { %1427 = dma.done.wait [#allocation6], 512  }
  0x1c   :  { %1428 = vsyncadd [#allocation6], 4294966784 }
  0x1d   :  { %1429 = dma.done.wait [#allocation9], 4096  }
  0x1e   :  { %1430 = vsyncadd [#allocation9], 4294963200 }
  0x1f   :  { %1431 = dma.done.wait [#allocation12], 7168  }
  0x20   :  { %1432 = vsyncadd [#allocation12], 4294960128  ;;  %v1134_v0 = vld [vmem:[#allocation8 + $0x38] sm:$0xff]  ;;  %v1133_v2 = vld [vmem:[#allocation8 + $0x30] sm:$0xff]  ;;  %s885_s0 = sshll.u32 %s1609_s11, 4  ;;  %s1449_s24 = smov 384   ;;  %s886_s0 = int_to_ptr.hbm [resolvable:$true] %s885_s0 }
  0x21   :  { %v1142_v1 = vld [vmem:[#allocation8 + $0x78] sm:$0xff]  ;;  %255 = vmatpush.bf16.msra.mxu0 %v1134_v0  ;;  %v1141_v3 = vld [vmem:[#allocation8 + $0x70] sm:$0xff]  ;;  %v1132_v6 = vld [vmem:[#allocation8 + $0x28] sm:$0xff]  ;;  %s1450_s27 = smov 24  }
  0x22   :  { %339 = vmatpush.bf16.msra.mxu1 %v1142_v1  ;;  %v148_v4 = vld [vmem:[#allocation2] sm:$0xff]  ;;  %v1550_v5 = vld [vmem:[#allocation2 + $0x8] sm:$0xff]  ;;  %v1140_v7 = vld [vmem:[#allocation8 + $0x68] sm:$0xff] }
  0x23   :  { %v150_v8 = vadd.f32 1.0, %v148_v4  ;;  %v1552_v9 = vld [vmem:[#allocation5] sm:$0xff]  ;;  %v159_v10 = vadd.f32 1.0, %v1550_v5  ;;  %v1555_v11 = vld [vmem:[#allocation5 + $0x8] sm:$0xff]  ;;  %v1150_v13 = vld [vmem:[#allocation10 + $0x38] sm:$0xff]  ;;  %v153_v21 = vmul.f32 -0.5, %v148_v4 }
  0x24   :  { %v170_v12 = vadd.f32 1.0, %v1552_v9  ;;  %v1158_v14 = vld [vmem:[#allocation10 + $0x78] sm:$0xff]  ;;  %v1131_v15 = vld [vmem:[#allocation8 + $0x20] sm:$0xff]  ;;  %v179_v17 = vadd.f32 1.0, %v1555_v11  ;;  %422 = vmatpush.bf16.msra.mxu2 %v1150_v13  ;;  %v1149_v18 = vld [vmem:[#allocation10 + $0x30] sm:$0xff]  ;;  %v162_v23 = vmul.f32 -0.5, %v1550_v5 }
  0x25   :  { %256 = vmatpush.bf16.msra.mxu0 %v1133_v2  ;;  %v1139_v16 = vld [vmem:[#allocation8 + $0x60] sm:$0xff]  ;;  %1221 = vlog2.f32 %v150_v8  ;;  %506 = vmatpush.bf16.msra.mxu3 %v1158_v14  ;;  %v1157_v19 = vld [vmem:[#allocation10 + $0x70] sm:$0xff]  ;;  %v1130_v20 = vld [vmem:[#allocation8 + $0x18] sm:$0xff]  ;;  %v173_v24 = vmul.f32 -0.5, %v1552_v9  ;;  %v182_v25 = vmul.f32 -0.5, %v1555_v11  ;;  %v154_v31 = vadd.f32 1.0, %v153_v21 }
  0x26   :  { %340 = vmatpush.bf16.msra.mxu1 %v1141_v3  ;;  %1223 = vlog2.f32 %v159_v10  ;;  %v1138_v22 = vld [vmem:[#allocation8 + $0x58] sm:$0xff]  ;;  %v1148_v26 = vld [vmem:[#allocation10 + $0x28] sm:$0xff]  ;;  %v156_v29 = vand.u32 2147483647, %v148_v4  ;;  %v163_v32 = vadd.f32 1.0, %v162_v23  ;;  %v1129_v35 = vld [vmem:[#allocation8 + $0x10] sm:$0xff] }
  0x27   :  { %1225 = vlog2.f32 %v170_v12  ;;  %v1156_v27 = vld [vmem:[#allocation10 + $0x68] sm:$0xff]  ;;  %v174_v33 = vadd.f32 1.0, %v173_v24  ;;  %v1137_v36 = vld [vmem:[#allocation8 + $0x50] sm:$0xff]  ;;  %v165_v37 = vand.u32 2147483647, %v1550_v5  ;;  %v183_v38 = vadd.f32 1.0, %v182_v25 }
  0x28   :  { %1227 = vlog2.f32 %v179_v17  ;;  %423 = vmatpush.bf16.msra.mxu2 %v1149_v18  ;;  %v176_v40 = vand.u32 2147483647, %v1552_v9  ;;  %v185_v41 = vand.u32 2147483647, %v1555_v11  ;;  %v1147_v42 = vld [vmem:[#allocation10 + $0x20] sm:$0xff]  ;;  %v1128_v45 = vld [vmem:[#allocation8 + $0x8] sm:$0xff]  ;;  %v155_v48 = vmul.f32 %v154_v31, %v148_v4 }
  0x29   :  { %257 = vmatpush.bf16.msra.mxu0 %v1132_v6  ;;  %507 = vmatpush.bf16.msra.mxu3 %v1157_v19  ;;  %v1155_v43 = vld [vmem:[#allocation10 + $0x60] sm:$0xff]  ;;  %vm1565_vm0 = vcmp.lt.f32.partialorder %v156_v29, 0.0004427343  ;;  %v1136_v46 = vld [vmem:[#allocation8 + $0x48] sm:$0xff]  ;;  %v164_v49 = vmul.f32 %v163_v32, %v1550_v5  ;;  %v175_v50 = vmul.f32 %v174_v33, %v1552_v9  ;;  %v184_v54 = vmul.f32 %v183_v38, %v1555_v11  ;;  %v1146_v63 = vld [vmem:[#allocation10 + $0x18] sm:$0xff] }
  0x2a   :  { %341 = vmatpush.bf16.msra.mxu1 %v1140_v7  ;;  %vm166_vm1 = vcmp.lt.f32.partialorder %v165_v37, 0.0004427343  ;;  %vm177_vm2 = vcmp.lt.f32.partialorder %v176_v40, 0.0004427343  ;;  %vm186_vm3 = vcmp.lt.f32.partialorder %v185_v41, 0.0004427343 }
  0x2b   :  { %v1222_v28 = vpop.eup %1221  ;;  %v1127_v56 = vld [vmem:[#allocation8] sm:$0xff]  ;;  %v1154_v0 = vld [vmem:[#allocation10 + $0x58] sm:$0xff]  ;;  %v1145_v1 = vld [vmem:[#allocation10 + $0x10] sm:$0xff] }
  0x2c   :  { %v1224_v30 = vpop.eup %1223  ;;  %424 = vmatpush.bf16.msra.mxu2 %v1148_v26  ;;  %v152_v47 = vmul.f32 0.6931472, %v1222_v28  ;;  %v1135_v57 = vld [vmem:[#allocation8 + $0x40] sm:$0xff]  ;;  %v1153_v2 = vld [vmem:[#allocation10 + $0x50] sm:$0xff]  ;;  %v1144_v3 = vld [vmem:[#allocation10 + $0x8] sm:$0xff] }
  0x2d   :  { %258 = vmatpush.bf16.msra.mxu0 %v1131_v15  ;;  %v1226_v34 = vpop.eup %1225  ;;  %508 = vmatpush.bf16.msra.mxu3 %v1156_v27  ;;  %v161_v51 = vmul.f32 0.6931472, %v1224_v30  ;;  %v1152_v4 = vld [vmem:[#allocation10 + $0x48] sm:$0xff]  ;;  %v1143_v5 = vld [vmem:[#allocation10] sm:$0xff]  ;;  %v1174_v7 = vld [vmem:[#allocation11 + $0x78] sm:$0xff] }
  0x2e   :  { %342 = vmatpush.bf16.msra.mxu1 %v1139_v16  ;;  %v1228_v39 = vpop.eup %1227  ;;  %v172_v52 = vmul.f32 0.6931472, %v1226_v34  ;;  %v158_v55 = vsel %vm1565_vm0, %v155_v48, %v152_v47  ;;  %v1151_v6 = vld [vmem:[#allocation10 + $0x40] sm:$0xff]  ;;  %v1166_v8 = vld [vmem:[#allocation11 + $0x38] sm:$0xff]  ;;  %v1173_v9 = vld [vmem:[#allocation11 + $0x70] sm:$0xff] }
  0x2f   :  { %v181_v53 = vmul.f32 0.6931472, %v1228_v39  ;;  %v167_v58 = vsel %vm166_vm1, %v164_v49, %v161_v51  ;;  %v1165_v10 = vld [vmem:[#allocation11 + $0x30] sm:$0xff]  ;;  %v1172_v11 = vld [vmem:[#allocation11 + $0x68] sm:$0xff]  ;;  %v1171_v13 = vld [vmem:[#allocation11 + $0x60] sm:$0xff] }
  0x30   :  { %425 = vmatpush.bf16.msra.mxu2 %v1147_v42  ;;  %v178_v59 = vsel %vm177_vm2, %v175_v50, %v172_v52  ;;  %v188_v61 = vpack.c.bf16 %v167_v58, %v158_v55  ;;  %v1164_v12 = vld [vmem:[#allocation11 + $0x28] sm:$0xff]  ;;  %v1163_v14 = vld [vmem:[#allocation11 + $0x20] sm:$0xff]  ;;  %v1215_v17 = vld [vmem:[%s1602_s4] ss:$0 sm:$0xff] }
  0x31   :  { %259 = vmatpush.bf16.msra.mxu0 %v1130_v20  ;;  %509 = vmatpush.bf16.msra.mxu3 %v1155_v43  ;;  %v187_v60 = vsel %vm186_vm3, %v184_v54, %v181_v53  ;;  %v1216_v18 = vld [vmem:[%s1602_s4 + $0x1] ss:$0 sm:$0xff]  ;;  %v1170_v31 = vld [vmem:[#allocation11 + $0x58] sm:$0xff]  ;;  %v1167_v37 = vld [vmem:[#allocation11 + $0x40] sm:$0xff] }
  0x32   :  { %343 = vmatpush.bf16.msra.mxu1 %v1138_v22  ;;  %v271_v62 = vpack.c.bf16 %v187_v60, %v178_v59  ;;  %v1162_v32 = vld [vmem:[#allocation11 + $0x18] sm:$0xff]  ;;  %v1169_v33 = vld [vmem:[#allocation11 + $0x50] sm:$0xff]  ;;  %v1159_v38 = vld [vmem:[#allocation11] sm:$0xff] }
  0x33   :  { %v1161_v34 = vld [vmem:[#allocation11 + $0x10] sm:$0xff]  ;;  %v1182_v39 = vld [vmem:[#allocation11 + $0xb8] sm:$0xff]  ;;  %v1180_v41 = vld [vmem:[#allocation11 + $0xa8] sm:$0xff] }
  0x34   :  { %426 = vmatpush.bf16.msra.mxu2 %v1146_v63  ;;  %v1181_v40 = vld [vmem:[#allocation11 + $0xb0] sm:$0xff]  ;;  %v1179_v42 = vld [vmem:[#allocation11 + $0xa0] sm:$0xff]  ;;  %v1178_v59 = vld [vmem:[#allocation11 + $0x98] sm:$0xff] }
  0x35   :  { %260 = vmatpush.bf16.msra.mxu0 %v1129_v35  ;;  %510 = vmatpush.bf16.msra.mxu3 %v1154_v0  ;;  %v1168_v35 = vld [vmem:[#allocation11 + $0x48] sm:$0xff]  ;;  %v1177_v60 = vld [vmem:[#allocation11 + $0x90] sm:$0xff]  ;;  %v802_v0 = vld [vmem:[#allocation13 + $0xf8] sm:$0xff] }
  0x36   :  { %344 = vmatpush.bf16.msra.mxu1 %v1137_v36  ;;  %v1160_v36 = vld [vmem:[#allocation11 + $0x8] sm:$0xff]  ;;  %v801_v63 = vld [vmem:[#allocation13 + $0xf0] sm:$0xff] }
  0x38   :  { %427 = vmatpush.bf16.msra.mxu2 %v1145_v1  ;;  %v799_v1 = vld [vmem:[#allocation13 + $0xe0] sm:$0xff] }
  0x39   :  { %261 = vmatpush.bf16.msra.mxu0 %v1128_v45  ;;  %511 = vmatpush.bf16.msra.mxu3 %v1153_v2  ;;  %v1217_v45 = vld [vmem:[%s1604_s6] ss:$0 sm:$0xff]  ;;  %v800_v2 = vld [vmem:[#allocation13 + $0xe8] sm:$0xff] }
  0x3a   :  { %345 = vmatpush.bf16.msra.mxu1 %v1136_v46  ;;  %v1218_v46 = vld [vmem:[%s1604_s6 + $0x1] ss:$0 sm:$0xff] }
  0x3c   :  { %428 = vmatpush.bf16.msra.mxu2 %v1144_v3  ;;  %v797_v3 = vld [vmem:[#allocation13 + $0xd0] sm:$0xff] }
  0x3d   :  { %262 = vmatpush.bf16.msra.mxu0 %v1127_v56  ;;  %512 = vmatpush.bf16.msra.mxu3 %v1152_v4  ;;  %v798_v4 = vld [vmem:[#allocation13 + $0xd8] sm:$0xff] }
  0x3e   :  { %346 = vmatpush.bf16.msra.mxu1 %v1135_v57 }
  0x40   :  { %263 = vmatmul.bf16.vlgmr.msra.gmra.mxu0 %v188_v61  ;;  %429 = vmatpush.bf16.msra.mxu2 %v1143_v5  ;;  %v1176_v61 = vld [vmem:[#allocation11 + $0x88] sm:$0xff]  ;;  %v795_v5 = vld [vmem:[#allocation13 + $0xc0] sm:$0xff] }
  0x41   :  { %347 = vmatmul.bf16.vlgmr.msra.gmra.mxu1 %v271_v62  ;;  %513 = vmatpush.bf16.msra.mxu3 %v1151_v6  ;;  %v1175_v62 = vld [vmem:[#allocation11 + $0x80] sm:$0xff]  ;;  %v796_v6 = vld [vmem:[#allocation13 + $0xc8] sm:$0xff] }
  0x42   :  { %605 = vmatpush.bf16.msrb.mxu0 %v1174_v7  ;;  %667 = vmatpush.bf16.msrb.mxu1 %v1166_v8  ;;  %v793_v7 = vld [vmem:[#allocation13 + $0xb0] sm:$0xff]  ;;  %v794_v8 = vld [vmem:[#allocation13 + $0xb8] sm:$0xff] }
  0x44   :  { %755 = vmatpush.bf16.msrb.mxu2 %v1182_v39  ;;  %v773_v39 = vld [vmem:[#allocation13 + $0x10] sm:$0xff] }
  0x45   :  { %809 = vmatpush.msrb.mxu3 %v801_v63  ;;  %v867_v63 = vld [vmem:[#allocation7] sm:$0xff] }
  0x46   :  { %606 = vmatpush.bf16.msrb.mxu0 %v1173_v9  ;;  %668 = vmatpush.bf16.msrb.mxu1 %v1165_v10  ;;  %v791_v9 = vld [vmem:[#allocation13 + $0xa0] sm:$0xff]  ;;  %v792_v10 = vld [vmem:[#allocation13 + $0xa8] sm:$0xff] }
  0x47   :  { %810 = vmatpush.msrb.mxu3 %v799_v1 }
  0x48   :  { %756 = vmatpush.bf16.msrb.mxu2 %v1181_v40  ;;  %v774_v40 = vld [vmem:[#allocation13 + $0x18] sm:$0xff] }
  0x49   :  { %811 = vmatpush.msrb.mxu3 %v797_v3 }
  0x4a   :  { %607 = vmatpush.bf16.msrb.mxu0 %v1172_v11  ;;  %669 = vmatpush.bf16.msrb.mxu1 %v1164_v12  ;;  %v789_v11 = vld [vmem:[#allocation13 + $0x90] sm:$0xff]  ;;  %v790_v12 = vld [vmem:[#allocation13 + $0x98] sm:$0xff] }
  0x4b   :  { %812 = vmatpush.msrb.mxu3 %v795_v5 }
  0x4c   :  { %757 = vmatpush.bf16.msrb.mxu2 %v1180_v41  ;;  %v771_v41 = vld [vmem:[#allocation13] sm:$0xff] }
  0x4d   :  { %813 = vmatpush.msrb.mxu3 %v793_v7 }
  0x4e   :  { %608 = vmatpush.bf16.msrb.mxu0 %v1171_v13  ;;  %670 = vmatpush.bf16.msrb.mxu1 %v1163_v14  ;;  %v787_v13 = vld [vmem:[#allocation13 + $0x80] sm:$0xff]  ;;  %v788_v14 = vld [vmem:[#allocation13 + $0x88] sm:$0xff] }
  0x4f   :  { %814 = vmatpush.msrb.mxu3 %v791_v9 }
  0x50   :  { %758 = vmatpush.bf16.msrb.mxu2 %v1179_v42  ;;  %v772_v42 = vld [vmem:[#allocation13 + $0x8] sm:$0xff] }
  0x51   :  { %815 = vmatpush.msrb.mxu3 %v789_v11 }
  0x52   :  { %609 = vmatpush.bf16.msrb.mxu0 %v1170_v31  ;;  %671 = vmatpush.bf16.msrb.mxu1 %v1162_v32 }
  0x53   :  { %816 = vmatpush.msrb.mxu3 %v787_v13 }
  0x54   :  { %759 = vmatpush.bf16.msrb.mxu2 %v1178_v59 }
  0x56   :  { %610 = vmatpush.bf16.msrb.mxu0 %v1169_v33  ;;  %672 = vmatpush.bf16.msrb.mxu1 %v1161_v34 }
  0x58   :  { %760 = vmatpush.bf16.msrb.mxu2 %v1177_v60 }
  0x5a   :  { %611 = vmatpush.bf16.msrb.mxu0 %v1168_v35  ;;  %673 = vmatpush.bf16.msrb.mxu1 %v1160_v36 }
  0x5c   :  { %761 = vmatpush.bf16.msrb.mxu2 %v1176_v61 }
  0x5e   :  { %612 = vmatpush.bf16.msrb.mxu0 %v1167_v37  ;;  %674 = vmatpush.bf16.msrb.mxu1 %v1159_v38  ;;  %v775_v37 = vld [vmem:[#allocation13 + $0x20] sm:$0xff]  ;;  %v776_v38 = vld [vmem:[#allocation13 + $0x28] sm:$0xff] }
  0x60   :  { %762 = vmatpush.bf16.msrb.mxu2 %v1175_v62 }
  0x62   :  { %832 = vmatpush.msra.mxu0 %v802_v0  ;;  %1183 = vmatpush.msra.mxu1 %v802_v0 }
  0x64   :  { %833 = vmatpush.msra.mxu0 %v800_v2  ;;  %1184 = vmatpush.msra.mxu1 %v800_v2 }
  0x66   :  { %834 = vmatpush.msra.mxu0 %v798_v4  ;;  %1185 = vmatpush.msra.mxu1 %v798_v4 }
  0x68   :  { %835 = vmatpush.msra.mxu0 %v796_v6  ;;  %1186 = vmatpush.msra.mxu1 %v796_v6 }
  0x6a   :  { %836 = vmatpush.msra.mxu0 %v794_v8  ;;  %1187 = vmatpush.msra.mxu1 %v794_v8  ;;  %v868_v8 = vld [vmem:[#allocation7 + $0x8] sm:$0xff] }
  0x6c   :  { %837 = vmatpush.msra.mxu0 %v792_v10  ;;  %1188 = vmatpush.msra.mxu1 %v792_v10 }
  0x6e   :  { %838 = vmatpush.msra.mxu0 %v790_v12  ;;  %1189 = vmatpush.msra.mxu1 %v790_v12 }
  0x70   :  { %839 = vmatpush.msra.mxu0 %v788_v14  ;;  %1190 = vmatpush.msra.mxu1 %v788_v14 }
  0xbd   :  { %v264_v15 = vpop.f32.mrf.mxu0 }
  0xbe   :  { %v348_v16 = vpop.f32.mrf.mxu1  ;;  %v265_v19 = vadd.f32 %v1215_v17, %v264_v15  ;;  %v785_v15 = vld [vmem:[#allocation13 + $0x70] sm:$0xff] }
  0xbf   :  { %v349_v20 = vadd.f32 %v1216_v18, %v348_v16  ;;  %v786_v16 = vld [vmem:[#allocation13 + $0x78] sm:$0xff]  ;;  %817 = vmatpush.msrb.mxu3 %v785_v15 }
  0xc0   :  { %v269_v25 = vmax.f32 %v265_v19, 0.0  ;;  %v783_v19 = vld [vmem:[#allocation13 + $0x60] sm:$0xff]  ;;  %840 = vmatpush.msra.mxu0 %v786_v16  ;;  %1191 = vmatpush.msra.mxu1 %v786_v16 }
  0xc1   :  { %v353_v26 = vmax.f32 %v349_v20, 0.0  ;;  %v784_v20 = vld [vmem:[#allocation13 + $0x68] sm:$0xff]  ;;  %818 = vmatpush.msrb.mxu3 %v783_v19 }
  0xc2   :  { %841 = vmatpush.msra.mxu0 %v784_v20  ;;  %1192 = vmatpush.msra.mxu1 %v784_v20 }
  0xc5   :  { %v266_v21 = vpop.f32.mrf.mxu0 }
  0xc6   :  { %v350_v22 = vpop.f32.mrf.mxu1  ;;  %v267_v23 = vadd.f32 %v1215_v17, %v266_v21  ;;  %v781_v21 = vld [vmem:[#allocation13 + $0x50] sm:$0xff] }
  0xc7   :  { %v351_v24 = vadd.f32 %v1216_v18, %v350_v22  ;;  %v782_v22 = vld [vmem:[#allocation13 + $0x58] sm:$0xff]  ;;  %819 = vmatpush.msrb.mxu3 %v781_v21 }
  0xc8   :  { %v270_v27 = vmax.f32 %v267_v23, 0.0  ;;  %842 = vmatpush.msra.mxu0 %v782_v22  ;;  %1193 = vmatpush.msra.mxu1 %v782_v22 }
  0xc9   :  { %v354_v28 = vmax.f32 %v351_v24, 0.0  ;;  %v1219_v24 = vld [vmem:[%s1606_s8] ss:$0 sm:$0xff] }
  0xca   :  { %v355_v29 = vpack.c.bf16 %v270_v27, %v269_v25  ;;  %v779_v25 = vld [vmem:[#allocation13 + $0x40] sm:$0xff]  ;;  %v777_v27 = vld [vmem:[#allocation13 + $0x30] sm:$0xff] }
  0xcb   :  { %v438_v30 = vpack.c.bf16 %v354_v28, %v353_v26  ;;  %v780_v26 = vld [vmem:[#allocation13 + $0x48] sm:$0xff]  ;;  %v778_v28 = vld [vmem:[#allocation13 + $0x38] sm:$0xff]  ;;  %820 = vmatpush.msrb.mxu3 %v779_v25 }
  0xcc   :  { %430 = vmatmul.bf16.vlgmr.msra.gmra.mxu2 %v355_v29  ;;  %843 = vmatpush.msra.mxu0 %v780_v26 }
  0xcd   :  { %514 = vmatmul.bf16.vlgmr.msra.gmra.mxu3 %v438_v30  ;;  %1194 = vmatpush.msra.mxu1 %v780_v26 }
  0xce   :  { %821 = vmatpush.msrb.mxu3 %v777_v27  ;;  %844 = vmatpush.msra.mxu0 %v778_v28 }
  0xcf   :  { %1195 = vmatpush.msra.mxu1 %v778_v28 }
  0xd0   :  { %822 = vmatpush.msrb.mxu3 %v775_v37  ;;  %845 = vmatpush.msra.mxu0 %v776_v38 }
  0xd1   :  { %1196 = vmatpush.msra.mxu1 %v776_v38 }
  0xd2   :  { %823 = vmatpush.msrb.mxu3 %v773_v39  ;;  %846 = vmatpush.msra.mxu0 %v774_v40 }
  0xd3   :  { %1197 = vmatpush.msra.mxu1 %v774_v40 }
  0xd4   :  { %824 = vmatpush.msrb.mxu3 %v771_v41  ;;  %847 = vmatpush.msra.mxu0 %v772_v42 }
  0xd5   :  { %1198 = vmatpush.msra.mxu1 %v772_v42 }
 0x14f   :  { %v431_v43 = vpop.f32.mrf.mxu2 }
 0x150   :  { %v515_v44 = vpop.f32.mrf.mxu3  ;;  %v432_v47 = vadd.f32 %v1217_v45, %v431_v43  ;;  %v1220_v43 = vld [vmem:[%s1606_s8 + $0x1] ss:$0 sm:$0xff]  ;;  %s1448_s8 = smov [#allocation14]  }
 0x151   :  { %v516_v48 = vadd.f32 %v1218_v46, %v515_v44 }
 0x152   :  { %v436_v53 = vmax.f32 %v432_v47, 0.0 }
 0x153   :  { %v520_v54 = vmax.f32 %v516_v48, 0.0 }
 0x157   :  { %v433_v49 = vpop.f32.mrf.mxu2 }
 0x158   :  { %v517_v50 = vpop.f32.mrf.mxu3  ;;  %v434_v51 = vadd.f32 %v1217_v45, %v433_v49 }
 0x159   :  { %v518_v52 = vadd.f32 %v1218_v46, %v517_v50  ;;  %v803_v50 = vld [vmem:[%s1608_s10] sm:$0x3]  ;;  %s883_s10 = sshll.u32 %s1448_s8, 4  ;;  %s884_s10 = int_to_ptr.vmem [resolvable:$true] %s883_s10 }
 0x15a   :  { %v437_v55 = vmax.f32 %v434_v51, 0.0  ;;  %v806_v51 = vperm.slane %v803_v50, 1 }
 0x15b   :  { %v521_v56 = vmax.f32 %v518_v52, 0.0 }
 0x15c   :  { %v522_v57 = vpack.c.bf16 %v437_v55, %v436_v53  ;;  %v805_v55 = vperm.slane %v803_v50, 0 }
 0x15d   :  { %v539_v58 = vpack.c.bf16 %v521_v56, %v520_v54 }
 0x15e   :  { %675 = vmatmul.bf16.vlgmr.msrb.gmra.mxu1 %v522_v57 }
 0x15f   :  { %613 = vmatmul.bf16.vlgmr.msrb.gmra.mxu0 %v539_v58 }
 0x1db   :  { %v676_v18 = vpop.f32.mrf.mxu1 }
 0x1dc   :  { %v614_v17 = vpop.f32.mrf.mxu0 }
 0x1dd   :  { %v677_v23 = vadd.f32 %v676_v18, %v614_v17 }
 0x1df   :  { %v683_v31 = vadd.f32 %v1219_v24, %v677_v23 }
 0x1e1   :  { %v685_v34 = vmax.f32 %v683_v31, 0.0 }
 0x1e3   :  { %v678_v30 = vpop.f32.mrf.mxu1 }
 0x1e4   :  { %v616_v29 = vpop.f32.mrf.mxu0 }
 0x1e5   :  { %v679_v32 = vadd.f32 %v678_v30, %v616_v29 }
 0x1e7   :  { %v684_v33 = vadd.f32 %v1219_v24, %v679_v32 }
 0x1e9   :  { %v686_v35 = vmax.f32 %v684_v33, 0.0 }
 0x1eb   :  { %v687_v36 = vpack.c.bf16 %v686_v35, %v685_v34 }
 0x1ed   :  { %763 = vmatmul.bf16.vlgmr.msrb.gmra.mxu2 %v687_v36 }
 0x270   :  { %v764_v44 = vpop.f32.mrf.mxu2 }
 0x271   :  { %v765_v45 = vadd.f32 %v1220_v43, %v764_v44 }
 0x273   :  { %v769_v46 = vmax.f32 %v765_v45, 0.0 }
 0x275   :  { %825 = vmatmul.f32.vlgmr.msrb.gmra.mxu3 %v769_v46  ;;  %848 = vmatmul.f32.vlgmr.msra.gmra.mxu0 %v769_v46 }
 0x278   :  { %v766_v47 = vpop.f32.mrf.mxu2 }
 0x279   :  { %v767_v48 = vadd.f32 %v1220_v43, %v766_v47 }
 0x27b   :  { %v770_v49 = vmax.f32 %v767_v48, 0.0 }
 0x27d   :  { %828 = vmatmul.f32.gmra.mxu3 %v770_v49  ;;  %851 = vmatmul.f32.vlgmr.msra.gmra.mxu1 %v770_v49 }
 0x2f2   :  { %v849_v52 = vpop.f32.mrf.mxu0 }
 0x2f3   :  { %v850_v53 = vadd.f32 %v849_v52, %v806_v51 }
 0x2f5   :  { %v1125_v54 = vclamps-f32 %v850_v53, 4.0 }
 0x2f7   :  { %v859_v56 = vmul.f32 0.25, %v1125_v54 }
 0x2f8   :  { %v826_v57 = vpop.f32.mrf.mxu3 }
 0x2f9   :  { %v861_v58 = vmul.f32 1.442695, %v859_v56  ;;  %v827_v59 = vadd.f32 %v826_v57, %v805_v55 }
 0x2fa   :  { %v852_v60 = vpop.f32.mrf.mxu1 }
 0x2fb   :  { %1229 = vpow2.f32 %v861_v58  ;;  %873 = vst [vmem:[#allocation14] sm:$0xff] %v827_v59  ;;  %v853_v61 = vadd.f32 %v852_v60, %v806_v51 }
 0x2fd   :  { %v1126_v62 = vclamps-f32 %v853_v61, 4.0 }
 0x2ff   :  { %v860_v0 = vmul.f32 0.25, %v1126_v62 }
 0x300   :  { %v829_v1 = vpop.f32.mrf.mxu3 }
 0x301   :  { %v1230_v2 = vpop.eup %1229  ;;  %v863_v3 = vmul.f32 1.442695, %v860_v0  ;;  %v830_v4 = vadd.f32 %v829_v1, %v805_v55 }
 0x302   :  { %v865_v5 = vmul.f32 %v1230_v2, %v1230_v2  ;;  %v869_v6 = vmul.f32 %v1230_v2, %v867_v63 }
 0x303   :  { %1231 = vpow2.f32 %v863_v3  ;;  %874 = vst [vmem:[#allocation14 + $0x18] sm:$0xff] %v830_v4 }
 0x304   :  { %875 = vst [vmem:[#allocation14 + $0x8] sm:$0xff] %v865_v5  ;;  %v871_v7 = vadd.f32 %v869_v6, %v827_v59 }
 0x306   :  { %877 = vst [vmem:[#allocation14 + $0x10] sm:$0xff] %v871_v7 }
 0x309   :  { %v1232_v9 = vpop.eup %1231 }
 0x30a   :  { %v866_v10 = vmul.f32 %v1232_v9, %v1232_v9  ;;  %v870_v11 = vmul.f32 %v1232_v9, %v868_v8 }
 0x30c   :  { %876 = vst [vmem:[#allocation14 + $0x20] sm:$0xff] %v866_v10  ;;  %v872_v12 = vadd.f32 %v870_v11, %v830_v4 }
 0x30e   :  { %878 = vst [vmem:[#allocation14 + $0x28] sm:$0xff] %v872_v12 }
 0x30f   :  { %891 = dma.vmem_to_hbm [thread:$0]  %s884_s10, 768, %s886_s0, [#allocation4], %s1449_s24, %s1449_s24, %s1450_s27  }
 0x310   :  { %1433 = dma.done.wait [#allocation4], 768  }
 0x311   :  { %1434 = vsyncadd [#allocation4], 4294966528 }
 0x312   :  { %896 = vsyncpa [#allocation3], 1 }
 0x313   :  { %897 = vsyncpa [#allocation6], 1 }
 0x314   :  { %898 = vsyncpa [#allocation9], 1 }
 0x315   :  { %899 = vsyncpa [#allocation12], 1 }
 0x316   :  { %900 = vsyncpa [#allocation4], 1 }

</bundles_post_ra>
